<compile_context>
chip_gen: v7x
topology: tpu7x:2x2x1
jax: 0.10.0
libtpu: 0.0.40
codegen_flags: <defaults>
</compile_context>

<pallas_src>
import math

import jax
import jax.numpy as jnp
from jax.experimental import pallas as pl
from jax.experimental.pallas import tpu as pltpu

_MiB = 1024 * 1024
_FAST_PATH_VMEM_BUDGET = 24 * _MiB  # stay well inside v7x's 32 MiB scoped VMEM


def _round_up(x, m):
    return ((x + m - 1) // m) * m


def _pick_tiling(n, max_tile, align, min_blocks=1):
    """Pick (padded_size, tile): padded_size = tile * nblocks, tile % align == 0,
    and over-padding stays below one tile (avoids e.g. B=300 -> 512)."""
    n_al = _round_up(max(n, 1), align)
    cap = _round_up(min(max_tile, n_al), align)
    nblocks = max(min_blocks, math.ceil(n_al / cap))
    tile = _round_up(math.ceil(n_al / nblocks), align)
    return tile * nblocks, tile


def _fused_kernel(x_ref, w_ref, b_ref, o_ref):
    # Fast path: whole (Kp, Np) weight + bias are VMEM-resident (constant
    # block index); grid only walks the batch axis.
    acc = jnp.dot(x_ref[...], w_ref[...], preferred_element_type=jnp.float32)
    o_ref[...] = jnp.maximum(acc + b_ref[...], 0.0).astype(o_ref.dtype)


def _tiled_kernel(x_ref, w_ref, b_ref, o_ref):
    # General path: K-innermost accumulate straight into the f32 output tile
    # (its block index is constant over k, so it stays VMEM-resident);
    # bias + ReLU happen once, on the last K step.
    k = pl.program_id(2)

    @pl.when(k == 0)
    def _():
        o_ref[...] = jnp.zeros_like(o_ref)

    o_ref[...] += jnp.dot(x_ref[...], w_ref[...],
                          preferred_element_type=jnp.float32)

    @pl.when(k == pl.num_programs(2) - 1)
    def _():
        o_ref[...] = jnp.maximum(o_ref[...] + b_ref[...], 0.0)


def share_layer(x, weight, bias, *, use_bf16=True, tm=512, tn=512, tk=512):
    """out = relu(x @ weight.T + bias)   (PyTorch nn.Linear + F.relu).

    x: (B, IN); weight: (HID, IN) (PyTorch layout); bias: (HID,). -> (B, HID) f32.
    """
    B, IN = x.shape
    HID, IN_w = weight.shape
    assert IN == IN_w, "weight/in-features mismatch"

    in_dtype = jnp.bfloat16 if use_bf16 else jnp.float32
    in_size = jnp.dtype(in_dtype).itemsize
    out_dtype = jnp.float32

    # Lanes are 128-wide; bf16 packs 16 rows per sublane tile.
    m_align = 16 if use_bf16 else 8
    # Give v7x's two TensorCores >=2 batch blocks when there is enough work
    # (near-free elsewhere: one extra ~0.35us grid step).
    min_m_blocks = 2 if B >= 256 else 1
    Mp, tm_e = _pick_tiling(B, tm, m_align, min_blocks=min_m_blocks)

    Np_full = _round_up(HID, 128)
    Kp_full = _round_up(IN, 128)

    # Fast path feasibility: whole weight resident in VMEM (double-buffer
    # counted conservatively).
    fast_footprint = (2 * Kp_full * Np_full * in_size   # weight
                      + 2 * tm_e * Kp_full * in_size    # x tiles
                      + 2 * tm_e * Np_full * 4          # f32 output tiles
                      + Np_full * 4)                    # bias
    fast_path = fast_footprint <= _FAST_PATH_VMEM_BUDGET

    if fast_path:
        Np, tn_e = Np_full, Np_full
        Kp, tk_e = Kp_full, Kp_full
    else:
        Np, tn_e = _pick_tiling(HID, tn, 128)
        Kp, tk_e = _pick_tiling(IN, tk, 128)

    # bf16 cast + ONE-TIME weight transpose to (IN, HID): every tile dot is
    # then plain NN (no per-tile XLU transpose competing with vmatmul).
    xq = x.astype(in_dtype)
    wq = weight.T.astype(in_dtype)
    bq = bias.astype(jnp.float32)

    # Zero padding is exact: extra K rows/cols contribute 0 to the dot, extra
    # HID columns (zero weight + zero bias) give relu(0)=0 and are sliced off.
    xp = xq if (Mp == B and Kp == IN) else jnp.pad(xq, ((0, Mp - B), (0, Kp - IN)))
    wp = wq if (Kp == IN and Np == HID) else jnp.pad(
        wq, ((0, Kp - IN), (0, Np - HID)))
    bp = bq if Np == HID else jnp.pad(bq, (0, Np - HID))
    b2d = bp.reshape(1, Np)

    if fast_path:
        grid = (Mp // tm_e,)
        in_specs = [
            pl.BlockSpec((tm_e, Kp), lambda i: (i, 0)),
            pl.BlockSpec((Kp, Np), lambda i: (0, 0)),   # resident weight
            pl.BlockSpec((1, Np), lambda i: (0, 0)),    # resident bias
        ]
        out_specs = pl.BlockSpec((tm_e, Np), lambda i: (i, 0))
        kernel = _fused_kernel
        dim_sem = ("parallel",)
        bytes_accessed = xp.nbytes + wp.nbytes + b2d.nbytes + Mp * Np * 4
        footprint = fast_footprint
    else:
        grid = (Mp // tm_e, Np // tn_e, Kp // tk_e)
        in_specs = [
            pl.BlockSpec((tm_e, tk_e), lambda i, j, k: (i, k)),
            pl.BlockSpec((tk_e, tn_e), lambda i, j, k: (k, j)),
            pl.BlockSpec((1, tn_e), lambda i, j, k: (0, j)),
        ]
        out_specs = pl.BlockSpec((tm_e, tn_e), lambda i, j, k: (i, j))
        kernel = _tiled_kernel
        dim_sem = ("parallel", "parallel", "arbitrary")
        # Each operand is re-streamed once per outer block of the other axis.
        bytes_accessed = (xp.nbytes * (Np // tn_e)
                          + wp.nbytes * (Mp // tm_e)
                          + b2d.nbytes * (Mp // tm_e)
                          + Mp * Np * 4)
        footprint = (2 * tm_e * tk_e * in_size + 2 * tk_e * tn_e * in_size
                     + 2 * tm_e * tn_e * 4 + tn_e * 4)

    # Size the VMEM budget from the actual footprint; cap at 64 MiB so we
    # never ask for more than v7x physically has.
    vmem_limit = int(min(64 * _MiB, max(32 * _MiB, 2 * footprint)))

    cost = pl.CostEstimate(
        flops=2 * Mp * Np * Kp,
        transcendentals=0,
        bytes_accessed=int(bytes_accessed),
    )

    out_p = pl.pallas_call(
        kernel,
        out_shape=jax.ShapeDtypeStruct((Mp, Np), out_dtype),
        grid_spec=pltpu.PrefetchScalarGridSpec(
            num_scalar_prefetch=0,
            grid=grid,
            in_specs=in_specs,
            out_specs=out_specs,
        ),
        compiler_params=pltpu.CompilerParams(
            dimension_semantics=dim_sem,
            vmem_limit_bytes=vmem_limit,
        ),
        cost_estimate=cost,
    )(xp, wp, b2d)

    if Mp == B and Np == HID:
        return out_p
    return out_p[:B, :HID]


if __name__ == "__main__":
    # Small shapes consistent with the module's forward: (batch, inputs)
    B, IN, HID = 8, 32, 64

    key = jax.random.PRNGKey(0)
    kx, kw, kb = jax.random.split(key, 3)

    x = jax.random.normal(kx, (B, IN), dtype=jnp.float32)
    # nn.Linear(inputs, hidden_size): weight (HID, IN), bias (HID,)
    weight = jax.random.normal(kw, (HID, IN), dtype=jnp.float32) * 0.1
    bias = jax.random.normal(kb, (HID,), dtype=jnp.float32) * 0.1

    out = jax.block_until_ready(share_layer(x, weight, bias))

    # Reference matching the kernel's bf16-input / f32-accumulate recipe,
    # plus a looser check against the pure f32 reference.
    ref_bf16 = jnp.maximum(
        jnp.dot(x.astype(jnp.bfloat16), weight.T.astype(jnp.bfloat16),
                preferred_element_type=jnp.float32) + bias, 0.0)
    ref_f32 = jnp.maximum(x @ weight.T + bias, 0.0)

    assert out.shape == (B, HID)
    assert out.dtype == jnp.float32
    assert jnp.allclose(out, ref_bf16, atol=1e-3, rtol=1e-3)
    assert jnp.allclose(out, ref_f32, atol=5e-2, rtol=5e-2)

    print("KERNEL_OK")
</pallas_src>

<mosaic_0001>
module attributes {stable_mosaic.version = 11 : i64} {
  func.func @_fused_kernel(%arg0: i32, %arg1: memref<16x128xbf16, #tpu.memory_space<vmem>>, %arg2: memref<128x128xbf16, #tpu.memory_space<vmem>>, %arg3: memref<1x128xf32, #tpu.memory_space<vmem>>, %arg4: memref<16x128xf32, #tpu.memory_space<vmem>>) attributes {dimension_semantics = [#tpu.dimension_semantics<parallel>], iteration_bounds = array<i64: 1>, scalar_prefetch = 0 : i64, scratch_operands = 0 : i64, tpu.core_type = #tpu.core_type<tc>, window_params = [{transform_indices = @transform_0, window_bounds = array<i64: 16, 128>}, {pipeline_mode = #tpu.pipeline_mode<synchronous>, transform_indices = @transform_1, window_bounds = array<i64: 128, 128>}, {pipeline_mode = #tpu.pipeline_mode<synchronous>, transform_indices = @transform_2, window_bounds = array<i64: 1, 128>}, {transform_indices = @transform_3, window_bounds = array<i64: 16, 128>}]} {
    %c0 = arith.constant 0 : index
    %c0_0 = arith.constant 0 : index
    %0 = vector.load %arg1[%c0, %c0_0] : memref<16x128xbf16, #tpu.memory_space<vmem>>, vector<16x128xbf16>
    %c0_1 = arith.constant 0 : index
    %c0_2 = arith.constant 0 : index
    %1 = vector.load %arg2[%c0_1, %c0_2] : memref<128x128xbf16, #tpu.memory_space<vmem>>, vector<128x128xbf16>
    %cst = arith.constant dense<0.000000e+00> : vector<16x128xf32>
    %2 = tpu.matmul %0, %1, %cst {dimension_numbers = #tpu.dot_dimension_numbers<[1], [0], [0], [1], [0, 0, 1, 1], [], []>} : vector<16x128xbf16>, vector<128x128xbf16>, vector<16x128xf32> -> vector<16x128xf32>
    %c0_3 = arith.constant 0 : index
    %c0_4 = arith.constant 0 : index
    %3 = vector.load %arg3[%c0_3, %c0_4] : memref<1x128xf32, #tpu.memory_space<vmem>>, vector<1x128xf32>
    %4 = vector.broadcast %3 : vector<1x128xf32> to vector<16x128xf32>
    %5 = arith.addf %2, %4 : vector<16x128xf32>
    %cst_5 = arith.constant 0.000000e+00 : f32
    %6 = vector.broadcast %cst_5 : f32 to vector<16x128xf32>
    %7 = arith.maximumf %5, %6 : vector<16x128xf32>
    %c0_6 = arith.constant 0 : index
    %c0_7 = arith.constant 0 : index
    %8 = vector.load %arg4[%c0_6, %c0_7] : memref<16x128xf32, #tpu.memory_space<vmem>>, vector<16x128xf32>
    tpu.vector_store %arg4[%c0_6, %c0_7], %7 {strides = array<i32>} : memref<16x128xf32, #tpu.memory_space<vmem>>, vector<16x128xf32>,
    return
  }
  func.func @transform_0(%arg0: i32) -> (i32, i32) {
    %c0_i32 = arith.constant 0 : i32
    %c0_i32_0 = arith.constant 0 : i32
    return %arg0, %c0_i32 : i32, i32
  }
  func.func @transform_1(%arg0: i32) -> (i32, i32) {
    %c0_i32 = arith.constant 0 : i32
    %c0_i32_0 = arith.constant 0 : i32
    %c0_i32_1 = arith.constant 0 : i32
    return %c0_i32, %c0_i32_0 : i32, i32
  }
  func.func @transform_2(%arg0: i32) -> (i32, i32) {
    %c0_i32 = arith.constant 0 : i32
    %c0_i32_0 = arith.constant 0 : i32
    %c0_i32_1 = arith.constant 0 : i32
    return %c0_i32, %c0_i32_0 : i32, i32
  }
  func.func @transform_3(%arg0: i32) -> (i32, i32) {
    %c0_i32 = arith.constant 0 : i32
    %c0_i32_0 = arith.constant 0 : i32
    return %arg0, %c0_i32 : i32, i32
  }
}

</mosaic_0001>

<bundles_post_ra>
// kernel: tpu_custom_call.1
= control target key start
LH: loop header
LB: loop body
LE: loop exit
PB: predicated region body
PF: predicated region fallthrough
CT: control target
= control target key end

     0   :  { %8 = vsyncpa [#allocation3], 0  ;;  %s383_s0 = inlined_call_operand.hbm [shape: bf16[16,128], index: 0, kind: input, shape index: {}]   ;;  %s384_s1 = inlined_call_operand.hbm [shape: bf16[128,128], index: 1, kind: input, shape index: {}]   ;;  %s385_s2 = inlined_call_operand.vmem [shape: f32[1,128], index: 2, kind: input, shape index: {}]   ;;  %s386_s3 = inlined_call_operand.hbm [shape: f32[16,128], index: 3, kind: output, shape index: {}]  }
   0x1   :  { %9 = vsyncpa [#allocation6], 0 }
   0x2   :  { %10 = vsyncpa [#allocation4], 0  ;;  %s315_s12 = smov [#allocation2]   ;;  %s243_s16 = scalar_lea.hbm %s383_s0, 128 }
   0x3   :  { %s16_s13 = sshll.u32 %s315_s12, 4  ;;  %p244_p0 = scmp.ne.s32.totalorder %s383_s0, %s243_s16  ;;  %s17_s13 = int_to_ptr.vmem [resolvable:$true] %s16_s13 }
   0x4   :  { %p247_p1 = scmp.lt.u32.totalorder %s243_s16, %s383_s0 }
   0x6   :  { %p249_p2 = pnand %p247_p1, %p244_p0 }
   0x8   :  { %252 = shalt.err (!%p249_p2)
}
   0x9   :  { %s253_s21 = scalar_lea.vmem %s17_s13, 128  ;;  %p258_p4 = scmp.lt.s32.totalorder %s17_s13, %s17_s13 }
   0xa   :  { %p254_p3 = scmp.ne.s32.totalorder %s17_s13, %s253_s21  ;;  %p259_p5 = scmp.lt.s32.totalorder %s253_s21, %s253_s21 }
   0xc   :  { %p260_p6 = por %p259_p5, %p258_p4 }
   0xe   :  { %p261_p7 = pnand %p260_p6, %p254_p3 }
  0x10   :  { %264 = shalt.err (!%p261_p7)
}
  0x11   :  { %s316_s22 = smov 64   ;;  %s317_s23 = smov 4  }
  0x12   :  { %22 = dma.hbm_to_vmem [thread:$0]  %s383_s0, 128, %s17_s13, [#allocation3], %s316_s22, %s316_s22, %s317_s23  }
  0x13   :  { %s318_s26 = smov [#allocation5]   ;;  %s265_s30 = scalar_lea.hbm %s384_s1, 1024 }
  0x14   :  { %s28_s27 = sshll.u32 %s318_s26, 4  ;;  %p266_p8 = scmp.ne.s32.totalorder %s384_s1, %s265_s30  ;;  %s29_s27 = int_to_ptr.vmem [resolvable:$true] %s28_s27 }
  0x15   :  { %p269_p9 = scmp.lt.u32.totalorder %s265_s30, %s384_s1 }
  0x17   :  { %p271_p10 = pnand %p269_p9, %p266_p8 }
  0x19   :  { %274 = shalt.err (!%p271_p10)
}
  0x1a   :  { %s275_s8 = scalar_lea.vmem %s29_s27, 1024  ;;  %p280_p12 = scmp.lt.s32.totalorder %s29_s27, %s29_s27 }
  0x1b   :  { %p276_p11 = scmp.ne.s32.totalorder %s29_s27, %s275_s8  ;;  %p281_p13 = scmp.lt.s32.totalorder %s275_s8, %s275_s8 }
  0x1d   :  { %p282_p0 = por %p281_p13, %p280_p12 }
  0x1f   :  { %p283_p1 = pnand %p282_p0, %p276_p11 }
  0x21   :  { %286 = shalt.err (!%p283_p1)
}
  0x22   :  { %34 = dma.hbm_to_vmem [thread:$0]  %s384_s1, 1024, %s29_s27, [#allocation6], %s316_s22, %s316_s22, %s317_s23  }
  0x23   :  { %309 = dma.done.wait [#allocation3], 128  }
  0x24   :  { %310 = vsyncadd [#allocation3], 4294967168 }
  0x25   :  { %311 = dma.done.wait [#allocation6], 1024  }
  0x26   :  { %312 = vsyncadd [#allocation6], 4294966272  ;;  %v319_v0 = vmov 0.0   ;;  %vm320_vm0 = vmmov 0   ;;  %v234_v1 = vld [vmem:[#allocation5] sm:$0xff]   ;;  %v235_v2 = vld [vmem:[#allocation5 + $0x8] sm:$0xff]  }
  0x27   :  { %205 = vmatprep.subr.bf16.mxu0 %v319_v0  ;;  %221 = vmatprep.mubr.msk.bf16.mxu0 %vm320_vm0, %v319_v0  ;;  %v236_v3 = vld [vmem:[#allocation5 + $0x10] sm:$0xff]   ;;  %v237_v4 = vld [vmem:[#allocation5 + $0x18] sm:$0xff]   ;;  %v238_v5 = vld [vmem:[#allocation5 + $0x20] sm:$0xff]   ;;  %s321_s11 = smov [#allocation7]  }
  0x28   :  { %206 = vmatpush3.bf16.msra.mxu0 %v234_v1  ;;  %v239_v6 = vld [vmem:[#allocation5 + $0x28] sm:$0xff]   ;;  %v240_v7 = vld [vmem:[#allocation5 + $0x30] sm:$0xff]   ;;  %v241_v8 = vld [vmem:[#allocation5 + $0x38] sm:$0xff]   ;;  %s173_s12 = sshll.u32 %s321_s11, 4  ;;  %s174_s12 = int_to_ptr.vmem [resolvable:$true] %s173_s12 }
  0x29   :  { %207 = vmatprep.subr.bf16.mxu0 %v319_v0  ;;  %v242_v9 = vld [vmem:[#allocation2] sm:$0xff]   ;;  %s287_s13 = scalar_lea.vmem %s174_s12, 256  ;;  %p292_p3 = scmp.lt.s32.totalorder %s174_s12, %s174_s12 }
  0x2a   :  { %v186_v10 = vld [vmem:[%s385_s2] ss:$0 sm:$0xff]  ;;  %p288_p2 = scmp.ne.s32.totalorder %s174_s12, %s287_s13  ;;  %p293_p4 = scmp.lt.s32.totalorder %s287_s13, %s287_s13 }
  0x2c   :  { %208 = vmatpush3.bf16.msra.mxu0 %v235_v2  ;;  %p294_p5 = por %p293_p4, %p292_p3 }
  0x2d   :  { %209 = vmatprep.subr.bf16.mxu0 %v319_v0 }
  0x2e   :  { %p295_p6 = pnand %p294_p5, %p288_p2 }
  0x30   :  { %210 = vmatpush3.bf16.msra.mxu0 %v236_v3 }
  0x31   :  { %211 = vmatprep.subr.bf16.mxu0 %v319_v0 }
  0x34   :  { %212 = vmatpush3.bf16.msra.mxu0 %v237_v4 }
  0x35   :  { %213 = vmatprep.subr.bf16.mxu0 %v319_v0 }
  0x38   :  { %214 = vmatpush3.bf16.msra.mxu0 %v238_v5 }
  0x39   :  { %215 = vmatprep.subr.bf16.mxu0 %v319_v0 }
  0x3c   :  { %216 = vmatpush3.bf16.msra.mxu0 %v239_v6 }
  0x3d   :  { %217 = vmatprep.subr.bf16.mxu0 %v319_v0 }
  0x40   :  { %218 = vmatpush3.bf16.msra.mxu0 %v240_v7 }
  0x41   :  { %219 = vmatprep.subr.bf16.mxu0 %v319_v0 }
  0x44   :  { %220 = vmatpush3.bf16.msra.mxu0 %v241_v8 }
  0x47   :  { %222 = vmatmul.mubr.bf16.vlgmr.msra.gmra.mrb[0].mxu0 %v242_v9 }
 0x11a   :  { %v157_v11 = vpop.f32.mrb[0].mxu0 }
 0x11b   :  { %v158_v12 = vadd.f32 %v186_v10, %v157_v11  ;;  %v223_v13 = vpop.f32.mrb[1].mxu0 }
 0x11c   :  { %v160_v14 = vpop.f32.mrb[2].mxu0 }
 0x11d   :  { %v164_v15 = vmax.f32 %v158_v12, 0.0  ;;  %v161_v16 = vadd.f32 %v186_v10, %v160_v14  ;;  %v224_v17 = vpop.f32.mrb[3].mxu0 }
 0x11f   :  { %166 = vst [vmem:[#allocation7] sm:$0xff] %v164_v15  ;;  %v165_v18 = vmax.f32 %v161_v16, 0.0 }
 0x121   :  { %167 = vst [vmem:[#allocation7 + $0x8] sm:$0xff] %v165_v18 }
 0x122   :  { %298 = shalt.err (!%p295_p6)
}
 0x123   :  { %s299_s15 = scalar_lea.hbm %s386_s3, 256 }
 0x124   :  { %p300_p7 = scmp.ne.s32.totalorder %s386_s3, %s299_s15  ;;  %p303_p8 = scmp.lt.u32.totalorder %s299_s15, %s386_s3 }
 0x126   :  { %p305_p9 = pnand %p303_p8, %p300_p7 }
 0x128   :  { %308 = shalt.err (!%p305_p9)
}
 0x129   :  { %s322_s20 = smov 128   ;;  %s323_s21 = smov 8  }
 0x12a   :  { %179 = dma.vmem_to_hbm [thread:$0]  %s174_s12, 256, %s386_s3, [#allocation4], %s322_s20, %s322_s20, %s323_s21  }
 0x12b   :  { %313 = dma.done.wait [#allocation4], 256  }
 0x12c   :  { %314 = vsyncadd [#allocation4], 4294967040 }
 0x12d   :  { %183 = vsyncpa [#allocation3], 1 }
 0x12e   :  { %184 = vsyncpa [#allocation6], 1 }
 0x12f   :  { %185 = vsyncpa [#allocation4], 1 }

</bundles_post_ra>
